<compile_context>
chip_gen: v7x
topology: tpu7x:2x2x1
jax: 0.10.0
libtpu: 0.0.40
codegen_flags: <defaults>
</compile_context>

<pallas_src>
import functools

import jax
import jax.numpy as jnp
from jax.experimental import pallas as pl
from jax.experimental.pallas import tpu as pltpu

# Module "parameters" (deterministic, from __init__ defaults)
EPS = 1e-5
BETA = 1.0            # unused in forward (kept for fidelity)
P_I_SCALE = 1e-4
P_BG_SCALE = 1e-4
PRIOR_I_RATE = 1.0    # p_I  = Exponential(1.0)
PRIOR_BG_LOC = 0.0    # p_bg = Normal(0.0, 0.5)
PRIOR_BG_SCALE = 0.5


def _loss_kernel(rate_ref, mcounts_ref, mask_ref, acc_ref, *, eps):
    """Accumulate sum_{b,s,p}[ mask*counts*log(lam) - mask*lam ] into a (1,1,P) lane row."""
    b = pl.program_id(1)

    @pl.when(b == 0)
    def _init():
        acc_ref[...] = jnp.zeros_like(acc_ref)

    # rate tile streamed in native dtype; upcast in-register (cheap VALU op per vreg).
    lam = rate_ref[...].astype(jnp.float32) + eps               # (TB, S, P)

    # Reduce over the MC-sample axis first (sublane reduce on the XLU), then apply
    # the per-pixel mask/counts factors only once per pixel:
    #   sum_s [ counts*log(lam) - lam ] * mask
    #     = mcounts * sum_s log(lam) - mask * sum_s lam
    slog = jnp.sum(jnp.log(lam), axis=1, keepdims=True)         # (TB, 1, P)
    slam = jnp.sum(lam, axis=1, keepdims=True)                  # (TB, 1, P)
    contrib = mcounts_ref[...] * slog - mask_ref[...] * slam    # (TB, 1, P)

    # Per-lane partial sums only; the cross-lane collapse happens once in the wrapper.
    acc_ref[...] += jnp.sum(contrib, axis=0, keepdims=True)     # (1, 1, P)


def pallas_loss(rate, counts, qI_rate, qbg_loc, qbg_scale, dead_pixel_mask,
                eps=EPS, p_I_scale=P_I_SCALE, p_bg_scale=P_BG_SCALE):
    B, S, P = rate.shape

    mask = jnp.squeeze(dead_pixel_mask, axis=-1).astype(jnp.float32)   # (B, P)
    counts_f = counts.astype(jnp.float32)                              # (B, P)
    mcounts = mask * counts_f                                          # (B, P)

    # Rate-independent pieces computed once in XLA (fused, never re-streamed per step).
    lgam_masked_sum = jnp.sum(mask * jax.lax.lgamma(counts_f + 1.0))
    mask_sum = jnp.sum(dead_pixel_mask.astype(jnp.float32))

    # ---- tiling / padding ------------------------------------------------------
    P_pad = ((P + 127) // 128) * 128                     # lane-dense pixel axis
    NSPLIT = 2 if B > 1 else 1                           # per-core partial sums (v7x megacore)

    itemsize = jnp.dtype(rate.dtype).itemsize
    target_tile_bytes = 4 << 20                          # ~4 MiB rate tile per step
    per_split = -(-B // NSPLIT)
    tb = max(1, target_tile_bytes // (S * P_pad * itemsize))
    tb = int(min(tb, per_split))
    nb_inner = -(-per_split // tb)
    B_pad = NSPLIT * nb_inner * tb

    pad_b, pad_p = B_pad - B, P_pad - P
    rate_p = jnp.pad(rate, ((0, pad_b), (0, 0), (0, pad_p)))           # native dtype
    mcounts3 = jnp.pad(mcounts, ((0, pad_b), (0, pad_p)))[:, None, :]  # (B_pad, 1, P_pad)
    mask3 = jnp.pad(mask, ((0, pad_b), (0, pad_p)))[:, None, :]        # zeros => 0 contribution

    row_map = lambda c, b: (c * nb_inner + b, 0, 0)

    acc = pl.pallas_call(
        functools.partial(_loss_kernel, eps=float(eps)),
        out_shape=jax.ShapeDtypeStruct((NSPLIT, 1, P_pad), jnp.float32),
        grid_spec=pltpu.PrefetchScalarGridSpec(
            num_scalar_prefetch=0,
            grid=(NSPLIT, nb_inner),
            in_specs=[
                pl.BlockSpec((tb, S, P_pad), row_map),   # rate (dominant stream)
                pl.BlockSpec((tb, 1, P_pad), row_map),   # mask * counts
                pl.BlockSpec((tb, 1, P_pad), row_map),   # mask
            ],
            out_specs=pl.BlockSpec((1, 1, P_pad), lambda c, b: (c, 0, 0)),
        ),
        compiler_params=pltpu.CompilerParams(
            dimension_semantics=("parallel", "arbitrary"),
            vmem_limit_bytes=48 << 20,
        ),
    )(rate_p, mcounts3, mask3)

    # ---- cheap finalization in JAX --------------------------------------------
    sum_ll = jnp.sum(acc) / S - lgam_masked_sum
    nll = -(sum_ll / mask_sum)

    # Analytic KL terms ([B,1] elementwise — XLA fuses these for free).
    qI_rate = qI_rate.astype(jnp.float32)
    qbg_loc = qbg_loc.astype(jnp.float32)
    qbg_scale = qbg_scale.astype(jnp.float32)
    # KL(Exp(qI_rate) || Exp(1)) = log(qI_rate) + 1/qI_rate - 1
    kl_I = jnp.log(qI_rate) + PRIOR_I_RATE / qI_rate - 1.0
    # KL(N(loc,scale) || N(0,0.5))
    var_ratio = (qbg_scale / PRIOR_BG_SCALE) ** 2
    t1 = ((qbg_loc - PRIOR_BG_LOC) / PRIOR_BG_SCALE) ** 2
    kl_bg = 0.5 * (var_ratio + t1 - 1.0 - jnp.log(var_ratio))
    kl_term = jnp.mean(kl_I) * p_I_scale + jnp.mean(kl_bg) * p_bg_scale
    return nll, kl_term


def reference_loss(rate, counts, qI_rate, qbg_loc, qbg_scale, dead_pixel_mask,
                   eps=EPS, p_I_scale=P_I_SCALE, p_bg_scale=P_BG_SCALE):
    """Pure-JAX reference mirroring the torch forward."""
    lam = rate.astype(jnp.float32) + eps
    counts_f = counts.astype(jnp.float32)
    ll = counts_f[:, None, :] * jnp.log(lam) - lam \
        - jax.lax.lgamma(counts_f + 1.0)[:, None, :]
    mask = jnp.squeeze(dead_pixel_mask, axis=-1).astype(jnp.float32)
    ll_mean = jnp.mean(ll, axis=1) * mask
    nll = -(jnp.sum(ll_mean) / jnp.sum(dead_pixel_mask.astype(jnp.float32)))
    kl_I = jnp.log(qI_rate) + 1.0 / qI_rate - 1.0
    var_ratio = (qbg_scale / PRIOR_BG_SCALE) ** 2
    kl_bg = 0.5 * (var_ratio + (qbg_loc / PRIOR_BG_SCALE) ** 2 - 1.0 - jnp.log(var_ratio))
    kl_term = jnp.mean(kl_I) * p_I_scale + jnp.mean(kl_bg) * p_bg_scale
    return nll, kl_term


def _run_case(key, B, S, P, rate_dtype):
    kr, kc, km, kqi, kql, kqs = jax.random.split(key, 6)
    rate = jax.random.uniform(kr, (B, S, P), jnp.float32, 0.1, 5.0).astype(rate_dtype)
    counts = jax.random.poisson(kc, 3.0, (B, P)).astype(jnp.float32)
    dead_pixel_mask = jax.random.bernoulli(km, 0.9, (B, P, 1)).astype(jnp.float32)
    qI_rate = jax.random.uniform(kqi, (B, 1), jnp.float32, 0.5, 2.0)
    qbg_loc = 0.3 * jax.random.normal(kql, (B, 1), jnp.float32)
    qbg_scale = jax.random.uniform(kqs, (B, 1), jnp.float32, 0.2, 0.8)

    nll, kl = pallas_loss(rate, counts, qI_rate, qbg_loc, qbg_scale, dead_pixel_mask)
    jax.block_until_ready((nll, kl))
    nll_ref, kl_ref = reference_loss(rate, counts, qI_rate, qbg_loc, qbg_scale,
                                     dead_pixel_mask)
    assert jnp.allclose(nll, nll_ref, rtol=1e-4, atol=1e-4), (nll, nll_ref)
    assert jnp.allclose(kl, kl_ref, rtol=1e-4, atol=1e-7), (kl, kl_ref)


if __name__ == "__main__":
    key = jax.random.PRNGKey(0)
    k1, k2 = jax.random.split(key)

    # Case 1: lane-aligned pixels, f32 rate.
    _run_case(k1, B=4, S=8, P=128, rate_dtype=jnp.float32)
    # Case 2: non-multiple-of-128 pixel count and native bf16 rate stream
    # (exercises pixel/batch padding and in-kernel upcast).
    _run_case(k2, B=3, S=5, P=200, rate_dtype=jnp.bfloat16)

    print("KERNEL_OK")
</pallas_src>

<mosaic_0001>
module attributes {stable_mosaic.version = 11 : i64} {
  func.func @_loss_kernel(%arg0: i32, %arg1: i32, %arg2: memref<2x8x128xf32, #tpu.memory_space<vmem>>, %arg3: memref<2x1x128xf32, #tpu.memory_space<vmem>>, %arg4: memref<2x1x128xf32, #tpu.memory_space<vmem>>, %arg5: memref<1x1x128xf32, #tpu.memory_space<vmem>>) attributes {dimension_semantics = [#tpu.dimension_semantics<parallel>, #tpu.dimension_semantics<arbitrary>], iteration_bounds = array<i64: 2, 1>, scalar_prefetch = 0 : i64, scratch_operands = 0 : i64, tpu.core_type = #tpu.core_type<tc>, window_params = [{transform_indices = @transform_0, window_bounds = array<i64: 2, 8, 128>}, {transform_indices = @transform_1, window_bounds = array<i64: 2, 1, 128>}, {transform_indices = @transform_2, window_bounds = array<i64: 2, 1, 128>}, {transform_indices = @transform_3, window_bounds = array<i64: 1, 1, 128>}]} {
    %c0_i32 = arith.constant 0 : i32
    %0 = arith.cmpi eq, %arg1, %c0_i32 : i32
    %1 = arith.extui %0 : i1 to i32
    %c0_i32_0 = arith.constant 0 : i32
    %2 = arith.cmpi ne, %1, %c0_i32_0 : i32
    scf.if %2 {
      %cst_18 = arith.constant 0.000000e+00 : f32
      %21 = vector.broadcast %cst_18 : f32 to vector<1x1x128xf32>
      %c0_19 = arith.constant 0 : index
      %c0_20 = arith.constant 0 : index
      %c0_21 = arith.constant 0 : index
      %22 = vector.load %arg5[%c0_19, %c0_20, %c0_21] : memref<1x1x128xf32, #tpu.memory_space<vmem>>, vector<1x1x128xf32>
      tpu.vector_store %arg5[%c0_19, %c0_20, %c0_21], %21 {strides = array<i32>} : memref<1x1x128xf32, #tpu.memory_space<vmem>>, vector<1x1x128xf32>,
    } else {
    }
    %c0 = arith.constant 0 : index
    %c0_1 = arith.constant 0 : index
    %c0_2 = arith.constant 0 : index
    %3 = vector.load %arg2[%c0, %c0_1, %c0_2] : memref<2x8x128xf32, #tpu.memory_space<vmem>>, vector<2x8x128xf32>
    %cst = arith.constant 9.99999974E-6 : f32
    %4 = vector.broadcast %cst : f32 to vector<2x8x128xf32>
    %5 = arith.addf %3, %4 : vector<2x8x128xf32>
    %6 = math.log %5 : vector<2x8x128xf32>
    %cst_3 = arith.constant dense<0.000000e+00> : vector<2x128xf32>
    %7 = vector.multi_reduction <add>, %6, %cst_3 [1] : vector<2x8x128xf32> to vector<2x128xf32>
    %8 = vector.shape_cast %7 : vector<2x128xf32> to vector<2x1x128xf32>
    %cst_4 = arith.constant dense<0.000000e+00> : vector<2x128xf32>
    %9 = vector.multi_reduction <add>, %5, %cst_4 [1] : vector<2x8x128xf32> to vector<2x128xf32>
    %10 = vector.shape_cast %9 : vector<2x128xf32> to vector<2x1x128xf32>
    %c0_5 = arith.constant 0 : index
    %c0_6 = arith.constant 0 : index
    %c0_7 = arith.constant 0 : index
    %11 = vector.load %arg3[%c0_5, %c0_6, %c0_7] : memref<2x1x128xf32, #tpu.memory_space<vmem>>, vector<2x1x128xf32>
    %12 = arith.mulf %11, %8 : vector<2x1x128xf32>
    %c0_8 = arith.constant 0 : index
    %c0_9 = arith.constant 0 : index
    %c0_10 = arith.constant 0 : index
    %13 = vector.load %arg4[%c0_8, %c0_9, %c0_10] : memref<2x1x128xf32, #tpu.memory_space<vmem>>, vector<2x1x128xf32>
    %14 = arith.mulf %13, %10 : vector<2x1x128xf32>
    %15 = arith.subf %12, %14 : vector<2x1x128xf32>
    %c0_11 = arith.constant 0 : index
    %c0_12 = arith.constant 0 : index
    %c0_13 = arith.constant 0 : index
    %16 = vector.load %arg5[%c0_11, %c0_12, %c0_13] : memref<1x1x128xf32, #tpu.memory_space<vmem>>, vector<1x1x128xf32>
    %cst_14 = arith.constant dense<0.000000e+00> : vector<1x128xf32>
    %17 = vector.multi_reduction <add>, %15, %cst_14 [0] : vector<2x1x128xf32> to vector<1x128xf32>
    %18 = vector.shape_cast %17 : vector<1x128xf32> to vector<1x1x128xf32>
    %19 = arith.addf %16, %18 : vector<1x1x128xf32>
    %c0_15 = arith.constant 0 : index
    %c0_16 = arith.constant 0 : index
    %c0_17 = arith.constant 0 : index
    %20 = vector.load %arg5[%c0_15, %c0_16, %c0_17] : memref<1x1x128xf32, #tpu.memory_space<vmem>>, vector<1x1x128xf32>
    tpu.vector_store %arg5[%c0_15, %c0_16, %c0_17], %19 {strides = array<i32>} : memref<1x1x128xf32, #tpu.memory_space<vmem>>, vector<1x1x128xf32>,
    return
  }
  func.func @transform_0(%arg0: i32, %arg1: i32) -> (i32, i32, i32) {
    %c1_i32 = arith.constant 1 : i32
    %0 = arith.muli %arg0, %c1_i32 : i32
    %1 = arith.addi %0, %arg1 : i32
    %c0_i32 = arith.constant 0 : i32
    %c0_i32_0 = arith.constant 0 : i32
    %c0_i32_1 = arith.constant 0 : i32
    return %1, %c0_i32, %c0_i32_0 : i32, i32, i32
  }
  func.func @transform_1(%arg0: i32, %arg1: i32) -> (i32, i32, i32) {
    %c1_i32 = arith.constant 1 : i32
    %0 = arith.muli %arg0, %c1_i32 : i32
    %1 = arith.addi %0, %arg1 : i32
    %c0_i32 = arith.constant 0 : i32
    %c0_i32_0 = arith.constant 0 : i32
    %c0_i32_1 = arith.constant 0 : i32
    return %1, %c0_i32, %c0_i32_0 : i32, i32, i32
  }
  func.func @transform_2(%arg0: i32, %arg1: i32) -> (i32, i32, i32) {
    %c1_i32 = arith.constant 1 : i32
    %0 = arith.muli %arg0, %c1_i32 : i32
    %1 = arith.addi %0, %arg1 : i32
    %c0_i32 = arith.constant 0 : i32
    %c0_i32_0 = arith.constant 0 : i32
    %c0_i32_1 = arith.constant 0 : i32
    return %1, %c0_i32, %c0_i32_0 : i32, i32, i32
  }
  func.func @transform_3(%arg0: i32, %arg1: i32) -> (i32, i32, i32) {
    %c0_i32 = arith.constant 0 : i32
    %c0_i32_0 = arith.constant 0 : i32
    %c0_i32_1 = arith.constant 0 : i32
    return %arg0, %c0_i32, %c0_i32_0 : i32, i32, i32
  }
}

</mosaic_0001>

<bundles_post_ra>
// kernel: tpu_custom_call.1
= control target key start
LH: loop header
LB: loop body
LE: loop exit
PB: predicated region body
PF: predicated region fallthrough
CT: control target
= control target key end

     0   :  { %8 = vsyncpa [#allocation3], 0  ;;  %s960_s0 = inlined_call_operand.hbm [shape: f32[4,8,128], index: 0, kind: input, shape index: {}]   ;;  %s961_s1 = inlined_call_operand.hbm [shape: f32[4,1,128], index: 1, kind: input, shape index: {}]   ;;  %s962_s2 = inlined_call_operand.vmem [shape: f32[4,1,128], index: 2, kind: input, shape index: {}]   ;;  %s963_s3 = inlined_call_operand.hbm [shape: f32[2,1,128], index: 3, kind: output, shape index: {}]  }
   0x1   :  { %10 = vsyncpa [#allocation3 + $0x1], 0 }
   0x2   :  { %11 = vsyncpa [#allocation6], 0 }
   0x3   :  { %13 = vsyncpa [#allocation6 + $0x1], 0 }
   0x4   :  { %14 = vsyncpa [#allocation4], 0 }
   0x5   :  { %16 = vsyncpa [#allocation4 + $0x1], 0  ;;  %s722_s12 = smov 0   ;;  %s724_s13 = smov 0  }
   0x6   :  { %s726_s14 = smov 0   ;;  %s728_s15 = smov 0  }
   0x7   :  { %s730_s16 = smov 0   ;;  %s732_s17 = smov 0  }
   0x8 LB: > { %s451_s18 = sadd.s32 4294967295, %s692_s17   ;;  %s452_s19 = sadd.s32 4294967294, %s692_s17   ;;  %s692_s17 = sphi %s732_s17, %s22_s17   ;;  %s688_s16 = sphi %s730_s16, %s981_s16   ;;  %s684_s15 = sphi %s728_s15, %s980_s15   ;;  %s680_s14 = sphi %s726_s14, %s979_s14   ;;  %s676_s13 = sphi %s724_s13, %s978_s13   ;;  %s672_s12 = sphi %s722_s12, %s977_s12  }
   0x9   : > { %s34_s20 = sadd.s32 1, %s688_s16  ;;  %s43_s21 = sadd.s32 1, %s680_s14 }
   0xa   : > { %p36_p0 = scmp.ge.s32.totalorder %s34_s20, 2  ;;  %p50_p1 = scmp.ne.s32.totalorder %s680_s14, %s676_s13 }
   0xb   : > { %p51_p2 = scmp.eq.s32.totalorder %s692_s17, 0  ;;  %p56_p3 = scmp.ne.s32.totalorder %s676_s13, %s672_s12 }
   0xc   : > { %s983_s20 = smov (%p36_p0, %s34_s20), 0  ;;  %p57_p5 = scmp.eq.s32.totalorder %s451_s18, 0 }
   0xd   : > { %p763_p4 = por %p51_p2, %p50_p1  ;;  %s40_s23 = ssub.s32 %s688_s16, %s983_s20 }
   0xe   : > { %p136_p6 = scmp.eq.s32.totalorder %s451_s18, 1  ;;  %p41_p7 = scmp.eq.s32.totalorder %s40_s23, 0 }
   0xf   : > { %p769_p8 = por %p57_p5, %p56_p3  ;;  %p142_p10 = scmp.eq.s32.totalorder %s452_s19, 1 }
  0x10   : > { %p773_p9 = por %p136_p6, %p50_p1  ;;  %p487_p13 = scmp.lt.s32.totalorder %s692_s17, 2 }
  0x11   : > { %s967_s24 = scalar_select %p769_p8, 1, 0 }
  0x12   : > { %s968_s25 = scalar_select %p773_p9, 1, 0 }
  0x13   : > { %s778_s26 = scalar_select %p41_p7, %s680_s14, %s43_s21  }
  0x14   : > { %p780_p11 = por %p142_p10, %p56_p3  ;;  %s787_s28 = sand.u32 1, %s680_s14  }
  0x15   : > { %s455_s29 = sshll.u32 %s787_s28, 4  ;;  %s468_s30 = sshll.u32 %s688_s16, 8 }
  0x16   : > { %s969_s27 = scalar_select %p780_p11, 1, 0 }
  0x17   : > { %s794_s6 = scalar_lea.hbm %s960_s0, %s468_s30  ;;  %s166_s7 = scalar_lea.vmem [#allocation2], %s455_s29 }
  0x18   : > { %s174_s8 = sshll.u32 %s166_s7, 4  ;;  %p800_p0 = pnand %p487_p13, %p763_p4  ;;  %s796_s8 = int_to_ptr.vmem [resolvable:$true] %s174_s8 }
  0x19   : > { %s163_s10 = scalar_lea.sflag [#allocation3], %s787_s28  ;;  %s546_s11 = scalar_lea.hbm %s794_s6, 256 }
  0x1a   : > { %p547_p2 = scmp.ne.s32.totalorder %s794_s6, %s546_s11  ;;  %p548_p3 = pneg %p800_p0 }
  0x1b   : > { %s551_s21 = scalar_lea.hbm %s960_s0, 512  ;;  %p552_p4 = scmp.lt.u32.totalorder %s794_s6, %s960_s0 }
  0x1c   : > { %p549_p5 = pnand %p548_p3, %p547_p2  ;;  %p553_p7 = scmp.lt.u32.totalorder %s551_s21, %s546_s11 }
  0x1d   : > { %p555_p13 = scmp.lt.u32.totalorder %s546_s11, %s794_s6 }
  0x1e   : > { %p550_p6 = pneg %p549_p5  ;;  %p554_p10 = por %p553_p7, %p552_p4 }
  0x20   : > { %p556_p12 = por %p555_p13, %p554_p10 }
  0x22   : > { %p557_p1 = pnand %p556_p12, %p550_p6 }
  0x24   : > { %560 = shalt.err (!%p557_p1)
}
  0x25   : > { %s561_s29 = scalar_lea.vmem %s796_s8, 256  ;;  %s694_s30 = smov [#allocation2]  }
  0x26   : > { %p562_p2 = scmp.ne.s32.totalorder %s796_s8, %s561_s29  ;;  %s566_s4 = sshll.u32 %s694_s30, 4  ;;  %s567_s4 = int_to_ptr.vmem [resolvable:$false] %s566_s4 }
  0x27   : > { %s568_s5 = scalar_lea.vmem %s567_s4, 512  ;;  %p569_p9 = scmp.lt.s32.totalorder %s796_s8, %s567_s4 }
  0x28   : > { %p564_p5 = pnand %p562_p2, %p548_p3  ;;  %p570_p4 = scmp.lt.s32.totalorder %s568_s5, %s561_s29 }
  0x2a   : > { %p565_p11 = pneg %p564_p5  ;;  %p571_p7 = por %p570_p4, %p569_p9 }
  0x2c   : > { %p572_p10 = pnand %p571_p7, %p565_p11 }
  0x2e   : > { %575 = shalt.err (!%p572_p10)
}
  0x2f   : > { %s695_s7 = smov 128   ;;  %s696_s11 = smov 8  }
  0x30   : > { %479 = dma.hbm_to_vmem [thread:$0]  (!%p800_p0), %s794_s6, 256, %s796_s8, %s163_s10, %s695_s7, %s695_s7, %s696_s11  }
  0x31   : > { %p214_p12 = scmp.lt.s32.totalorder %s692_s17, 3  ;;  %s458_s18 = sshll.u32 %s787_s28, 1 }
  0x32   : > { %s469_s19 = sshll.u32 %s688_s16, 5  ;;  %p971_p9 = scmp.ge.s32.totalorder %s692_s17, 1 }
  0x33   : > { %s845_s29 = scalar_lea.hbm %s961_s1, %s469_s19  ;;  %s188_s30 = scalar_lea.vmem [#allocation5], %s458_s18 }
  0x34   : > { %p838_p11 = pnand %p971_p9, %p214_p12  ;;  %s196_s4 = sshll.u32 %s188_s30, 4  ;;  %s847_s4 = int_to_ptr.vmem [resolvable:$true] %s196_s4 }
  0x35   : > { %s185_s6 = scalar_lea.sflag [#allocation6], %s787_s28  ;;  %s576_s8 = scalar_lea.hbm %s845_s29, 32 }
  0x36   : > { %p577_p1 = scmp.ne.s32.totalorder %s845_s29, %s576_s8  ;;  %s581_s7 = scalar_lea.hbm %s961_s1, 64 }
  0x37   : > { %p582_p2 = scmp.lt.u32.totalorder %s845_s29, %s961_s1  ;;  %p583_p5 = scmp.lt.u32.totalorder %s581_s7, %s576_s8 }
  0x38   : > { %p579_p6 = pnand %p577_p1, %p548_p3  ;;  %p585_p7 = scmp.lt.u32.totalorder %s576_s8, %s845_s29 }
  0x39   : > { %p584_p4 = por %p583_p5, %p582_p2 }
  0x3a   : > { %p580_p13 = pneg %p579_p6 }
  0x3b   : > { %p586_p10 = por %p585_p7, %p584_p4 }
  0x3d   : > { %p587_p12 = pnand %p586_p10, %p580_p13 }
  0x3f   : > { %590 = shalt.err (!%p587_p12)
}
  0x40   : > { %s591_s18 = scalar_lea.vmem %s847_s4, 32  ;;  %s697_s22 = smov [#allocation5]  }
  0x41   : > { %p592_p9 = scmp.ne.s32.totalorder %s847_s4, %s591_s18  ;;  %s596_s23 = sshll.u32 %s697_s22, 4  ;;  %s597_s23 = int_to_ptr.vmem [resolvable:$false] %s596_s23 }
  0x42   : > { %s598_s30 = scalar_lea.vmem %s597_s23, 64  ;;  %p599_p8 = scmp.lt.s32.totalorder %s847_s4, %s597_s23 }
  0x43   : > { %p594_p1 = pnand %p592_p9, %p548_p3  ;;  %p600_p2 = scmp.lt.s32.totalorder %s598_s30, %s591_s18 }
  0x45   : > { %p595_p6 = pneg %p594_p1  ;;  %p601_p5 = por %p600_p2, %p599_p8 }
  0x47   : > { %p602_p4 = pnand %p601_p5, %p595_p6 }
  0x49   : > { %605 = shalt.err (!%p602_p4)
}
  0x4a   : > { %s698_s8 = smov 16   ;;  %s699_s10 = smov 1  }
  0x4b   : > { %482 = dma.hbm_to_vmem [thread:$0]  (!%p800_p0), %s845_s29, 32, %s847_s4, %s185_s6, %s698_s8, %s698_s8, %s699_s10  }
  0x4c   : > { %218 = sbr.rel (%p838_p11) target bundleno = 139 (0x8b), region = 32  ;;  %s878_s5 = sand.u32 (!%p838_p11), 1, %s676_s13  }
  0x4d   : > { %s462_s7 = sshll.u32 (!%p838_p11), %s878_s5, 4  ;;  %s221_s11 = scalar_lea.sflag (!%p838_p11), [#allocation3], %s878_s5 }
  0x4e   : > { %s224_s19 = scalar_lea.vmem (!%p838_p11), [#allocation2], %s462_s7  ;;  %p973_p8 = scmp.ne.s32.totalorder (!%p838_p11), %s967_s24, 0 }
  0x53   : > { %659 = dma.done.wait (%p973_p8), %s221_s11, 256  }
  0x54   : > { %661 = vsyncadd (%p973_p8), %s221_s11, 4294967040  ;;  %s463_s28 = sshll.u32 %s878_s5, 1  ;;  %s230_s9 = scalar_lea.sflag [#allocation6], %s878_s5 }
  0x55   : > { %s888_s21 = scalar_lea.vmem [#allocation5], %s463_s28 }
  0x56   : > { %663 = dma.done.wait (%p973_p8), %s230_s9, 32  }
  0x57   : > { %665 = vsyncadd (%p973_p8), %s230_s9, 4294967264  ;;  %s895_s29 = scalar_lea.vmem [#allocation7], %s878_s5  ;;  %v700_v0 = vmov 0.0   ;;  %v281_v1 = vld [vmem:[%s224_s19] sm:$0xff]  ;;  %v282_v2 = vld [vmem:[%s224_s19 + $0x8] sm:$0xff]  ;;  %s464_s4 = sshll.u32 %s684_s15, 1 }
  0x58   : > { %280 = vst [vmem:[%s895_s29] sm:$0x1] %v700_v0  ;;  %v283_v3 = vadd.f32 1e-05, %v281_v1  ;;  %v284_v4 = vadd.f32 1e-05, %v282_v2  ;;  %p271_p0 = scmp.lt.s32.totalorder %s464_s4, 3 }
  0x59   : > { %v313_v33 = vld [vmem:[%s888_s21] sm:$0x1]  ;;  %v314_v35 = vld [vmem:[%s888_s21 + $0x1] sm:$0x1]  ;;  %vm324_vm0 = vcmask 1040384   ;;  %s465_s22 = sshll.u32 %s684_s15, 4 }
  0x5a   : > { %542 = vlog2.f32 %v283_v3  ;;  %v301_v5 = vrot.slane %v283_v3, 4  ;;  %v307_v6 = vrot.slane %v284_v4, 4  ;;  %s985_s4 = smov (!%p271_p0, %s464_s4), 3  ;;  %s343_s23 = sshll.u32 %s895_s29, 4  ;;  %s912_s23 = int_to_ptr.vmem [resolvable:$true] %s343_s23 }
  0x5b   : > { %544 = vlog2.f32 %v284_v4  ;;  %s273_s18 = scalar_lea.vmem %s962_s2, %s985_s4  ;;  %s910_s10 = scalar_lea.hbm %s963_s3, %s465_s22 }
  0x5c   : > { %v302_v7 = vadd.f32 %v301_v5, %v283_v3  ;;  %v308_v8 = vadd.f32 %v307_v6, %v284_v4  ;;  %v317_v29 = vld [vmem:[%s273_s18] sm:$0x1]  ;;  %v318_v31 = vld [vmem:[%s273_s18 + $0x1] sm:$0x1]  ;;  %s331_s7 = scalar_lea.sflag [#allocation4], %s878_s5  ;;  %s606_s11 = scalar_lea.vmem %s912_s23, 16 }
  0x5d   : > { %p607_p3 = scmp.ne.s32.totalorder %s912_s23, %s606_s11  ;;  %p974_p11 = scmp.ne.s32.totalorder %s968_s25, 0 }
  0x5e   : > { %v303_v9 = vrot.slane %v302_v7, 2  ;;  %v309_v10 = vrot.slane %v308_v8, 2  ;;  %s701_s15 = smov [#allocation7]  }
  0x5f   : > { %v323_v44 = vld [vmem:[%s895_s29] sm:$0x1]  ;;  %p608_p13 = pnand %p607_p3, %p974_p11  ;;  %s610_s19 = sshll.u32 %s701_s15, 4  ;;  %s611_s19 = int_to_ptr.vmem [resolvable:$false] %s610_s19 }
  0x60   : > { %v304_v14 = vadd.f32 %v303_v9, %v302_v7  ;;  %v310_v16 = vadd.f32 %v309_v10, %v308_v8  ;;  %s612_s28 = scalar_lea.vmem %s611_s19, 32  ;;  %p613_p10 = scmp.lt.s32.totalorder %s912_s23, %s611_s19 }
  0x61   : > { %p609_p7 = pneg %p608_p13  ;;  %p614_p12 = scmp.lt.s32.totalorder %s612_s28, %s606_s11 }
  0x62   : > { %v305_v20 = vrot.slane %v304_v14, 1  ;;  %v311_v22 = vrot.slane %v310_v16, 1 }
  0x63   : > { %p615_p9 = por %p614_p12, %p613_p10 }
  0x64   : > { %v543_v11 = vpop.eup %542  ;;  %v306_v26 = vadd.f32 %v305_v20, %v304_v14  ;;  %v312_v28 = vadd.f32 %v311_v22, %v310_v16 }
  0x65   : > { %v545_v12 = vpop.eup %544  ;;  %v286_v13 = vmul.f32 0.6931472, %v543_v11  ;;  %p616_p1 = pnand %p615_p9, %p609_p7 }
  0x66   : > { %v288_v15 = vmul.f32 0.6931472, %v545_v12  ;;  %v319_v36 = vmul.f32 %v317_v29, %v306_v26  ;;  %v320_v38 = vmul.f32 %v318_v31, %v312_v28 }
  0x67   : > { %v289_v17 = vrot.slane %v286_v13, 4 }
  0x68   : > { %v295_v18 = vrot.slane %v288_v15, 4 }
  0x69   : > { %v290_v19 = vadd.f32 %v289_v17, %v286_v13 }
  0x6a   : > { %v296_v21 = vadd.f32 %v295_v18, %v288_v15 }
  0x6b   : > { %v291_v23 = vrot.slane %v290_v19, 2 }
  0x6c   : > { %v297_v24 = vrot.slane %v296_v21, 2 }
  0x6d   : > { %v292_v25 = vadd.f32 %v291_v23, %v290_v19 }
  0x6e   : > { %v298_v27 = vadd.f32 %v297_v24, %v296_v21 }
  0x6f   : > { %v293_v30 = vrot.slane %v292_v25, 1 }
  0x70   : > { %v299_v32 = vrot.slane %v298_v27, 1 }
  0x71   : > { %v294_v34 = vadd.f32 %v293_v30, %v292_v25 }
  0x72   : > { %v300_v37 = vadd.f32 %v299_v32, %v298_v27 }
  0x73   : > { %v315_v39 = vmul.f32 %v313_v33, %v294_v34 }
  0x74   : > { %v316_v40 = vmul.f32 %v314_v35, %v300_v37 }
  0x75   : > { %v321_v41 = vsub.f32 %v315_v39, %v319_v36 }
  0x76   : > { %v322_v42 = vsub.f32 %v316_v40, %v320_v38 }
  0x77   : > { %v325_v43 = vsel %vm324_vm0, %v321_v41, 0.0 }
  0x78   : > { %v326_v45 = vsel %vm324_vm0, %v322_v42, 0.0 }
  0x79   : > { %v327_v46 = vadd.f32 %v326_v45, %v325_v43 }
  0x7b   : > { %v328_v47 = vadd.f32 %v327_v46, %v323_v44 }
  0x7d   : > { %329 = vst [vmem:[%s895_s29] sm:$0x1] %v328_v47 }
  0x7e   : > { %619 = shalt.err (!%p616_p1)
}
  0x7f   : > { %s620_s5 = scalar_lea.hbm %s910_s10, 16  ;;  %s624_s29 = scalar_lea.hbm %s963_s3, 32 }
  0x80   : > { %p621_p6 = scmp.ne.s32.totalorder %s910_s10, %s620_s5  ;;  %p625_p4 = scmp.lt.u32.totalorder %s910_s10, %s963_s3 }
  0x81   : > { %p626_p8 = scmp.lt.u32.totalorder %s624_s29, %s620_s5  ;;  %p628_p3 = scmp.lt.u32.totalorder %s620_s5, %s910_s10 }
  0x82   : > { %p622_p2 = pnand %p621_p6, %p974_p11 }
  0x83   : > { %p627_p0 = por %p626_p8, %p625_p4 }
  0x84   : > { %p623_p5 = pneg %p622_p2 }
  0x85   : > { %p629_p13 = por %p628_p3, %p627_p0 }
  0x87   : > { %p630_p7 = pnand %p629_p13, %p623_p5 }
  0x89   : > { %633 = shalt.err (!%p630_p7)
}
  0x8a   : > { %474 = dma.vmem_to_hbm [thread:$0]  (%p974_p11), %s912_s23, 16, %s910_s10, %s331_s7  }
  0x8b PF: > { %s355_s6 = sand.u32 1, %s672_s12   ;;  %p975_p10 = scmp.ne.s32.totalorder %s969_s27, 0 }
  0x8c   : > { %p976_p12 = scmp.ge.s32.totalorder %s692_s17, 2  ;;  %s356_s18 = scalar_lea.sflag [#allocation4], %s355_s6 }
  0x8e   : > { %p484_p9 = pnand %p976_p12, %p975_p10 }
  0x90   : > { %667 = dma.done.wait (!%p484_p9), %s356_s18, 16  }
  0x91   : > { %669 = vsyncadd (!%p484_p9), %s356_s18, 4294967280  ;;  %s22_s17 = sadd.s32 1, %s692_s17   ;;  %s977_s12 = smov %s676_s13 }
  0x92   : > { %p19_p1 = scmp.ge.s32.totalorder %s22_s17, 4   ;;  %s978_s13 = smov %s680_s14 }
  0x93   : > { %s979_s14 = smov %s778_s26  ;;  %s980_s15 = smov %s688_s16 }
  0x94   : > { %s981_s16 = smov %s983_s20  ;;  %21 = sbr.rel (!%p19_p1) target bundleno = 8 (0x8), region = 97 }
  0x9b   :  { %360 = vsyncpa [#allocation3], 1 }
  0x9c   :  { %362 = vsyncpa [#allocation3 + $0x1], 1 }
  0x9d   :  { %363 = vsyncpa [#allocation6], 1 }
  0x9e   :  { %365 = vsyncpa [#allocation6 + $0x1], 1 }
  0x9f   :  { %366 = vsyncpa [#allocation4], 1 }
  0xa0   :  { %368 = vsyncpa [#allocation4 + $0x1], 1 }

</bundles_post_ra>
